<compile_context>
chip_gen: v7x
topology: tpu7x:2x2x1
jax: 0.10.0
libtpu: 0.0.40
codegen_flags: <defaults>
</compile_context>

<pallas_src>
import jax
import jax.numpy as jnp
from jax.experimental import pallas as pl
from jax.experimental.pallas import tpu as pltpu


# ---------------------------------------------------------------------------
# Kernel
# ---------------------------------------------------------------------------
def _conv1x3x3_bn_relu_kernel(x_ref, w_ref, scale_ref, bias_ref, o_ref, acc_ref):
    # x_ref:     (Bt, H, W*Cin)      bf16, lane-dense (W folded into the lane axis)
    # w_ref:     (W*Cin, 3*W*Cout)   bf16, banded conv weights, kh-major columns
    # scale_ref: (1, W*Cout)         f32,  BN scale per Cout, tiled W times
    # bias_ref:  (1, W*Cout)         f32,  fused bias = (conv_b - mean)*scale + beta
    # o_ref:     (Bt, H, W*Cout)
    # acc_ref:   (Bt, H, W*Cout)     f32 VMEM scratch accumulator
    Bt, H, WCin = x_ref.shape
    WCout = o_ref.shape[-1]

    # Single lane-dense MXU matmul.  The banded weight handles the dw = -1/0/+1
    # taps, the Cin contraction and the W-edge zeros, so there is no im2col
    # scratch, no zero fill and no masked tap copies at all.
    x2 = x_ref[...].reshape(Bt * H, WCin)
    r = jnp.dot(x2, w_ref[...], preferred_element_type=jnp.float32)
    r = r.reshape(Bt, H, 3 * WCout)

    # Combine the three kernel rows (dh = -1, 0, +1) with static H offsets.
    # Column block kh*WCout:(kh+1)*WCout holds the partial conv of row h with
    # kernel row kh; it contributes to output row h - (kh - 1).
    acc_ref[...] = r[:, :, WCout:2 * WCout]                        # kh = 1 (dh = 0)
    if H > 1:
        acc_ref[:, 1:, :] += r[:, :H - 1, 0:WCout]                 # kh = 0 (dh = -1)
        acc_ref[:, :H - 1, :] += r[:, 1:, 2 * WCout:3 * WCout]     # kh = 2 (dh = +1)

    # Eval-mode BatchNorm + ReLU epilogue in f32 (scale applied here rather than
    # folded into bf16 weights, to keep accuracy when running_var is small).
    y = acc_ref[...] * scale_ref[...] + bias_ref[...]
    o_ref[...] = jnp.maximum(y, 0.0).astype(o_ref.dtype)


# ---------------------------------------------------------------------------
# Host-side helpers
# ---------------------------------------------------------------------------
def _ceil_to(v, m):
    return -(-v // m) * m


def _padded_bytes(shape, dtype):
    """VMEM bytes of a block after lane (128) / sublane (8 or 16) padding."""
    itemsize = jnp.dtype(dtype).itemsize
    sublane = {1: 32, 2: 16, 4: 8}.get(itemsize, 8)
    dims = list(shape)
    dims[-1] = _ceil_to(dims[-1], 128)
    if len(dims) >= 2:
        dims[-2] = _ceil_to(dims[-2], sublane)
    n = 1
    for d in dims:
        n *= d
    return n * itemsize


def _pick_block_batch(B, per_step_bytes_fn, budget_bytes, min_steps):
    """Largest divisor of B fitting the VMEM budget with >= min_steps grid steps.

    Prefer an even number of steps so the 'parallel' grid axis splits evenly
    across v7x's 2 TensorCores, each with enough steps to hide DMA latency.
    """
    divisors = [d for d in range(1, B + 1) if B % d == 0]
    fitting = [d for d in divisors if per_step_bytes_fn(d) <= budget_bytes] or [1]
    enough = [d for d in fitting if B // d >= min_steps]
    cands = enough or fitting
    even = [d for d in cands if (B // d) % 2 == 0]
    return max(even or cands)


def _banded_weights(w, W):
    """PyTorch OIDHW (Cout, Cin, 1, 3, 3) -> banded (W*Cin, 3*W*Cout) bf16.

    Column index = kh*(W*Cout) + w_out*Cout + co.
    Row index    = w_in*Cin + ci.
    Entry        = w[co, ci, 0, kh, w_in - w_out + 1] if |w_in - w_out| <= 1 else 0,
    so one matmul performs the dw-conv + Cin contraction with correct W-edge
    zero padding.
    """
    w_hwio = jnp.transpose(w[:, :, 0, :, :], (2, 3, 1, 0))   # (kh, kw, Cin, Cout)
    wi = jnp.arange(W)[:, None]
    wo = jnp.arange(W)[None, :]
    kw = wi - wo + 1                                          # (W_in, W_out)
    valid = (kw >= 0) & (kw <= 2)
    band = w_hwio[:, jnp.clip(kw, 0, 2), :, :]                # (kh, Win, Wout, Cin, Cout)
    band = band * valid[None, :, :, None, None].astype(band.dtype)
    band = band.transpose(1, 3, 0, 2, 4)                      # (Win, Cin, kh, Wout, Cout)
    Cin, Cout = w.shape[1], w.shape[0]
    return band.reshape(W * Cin, 3 * W * Cout).astype(jnp.bfloat16)


def conv_1x3x3_bn_relu_lane_dense(x_lane, w, b, gamma, beta, run_mean, run_var,
                                  *, W, eps=1e-5, out_dtype=jnp.bfloat16):
    """Conv_1x3x3 + BN(eval) + ReLU on lane-dense activations.

    x_lane: (B, H, W*Cin) channels-last with W folded into the lane axis, where
            B = N*D.  Returns (B, H, W*Cout) in out_dtype (bf16 by default so a
            following Conv_1x3x3 block consumes it directly).
    """
    B, H, WCin = x_lane.shape
    Cin = WCin // W
    Cout = w.shape[0]
    WCout = W * Cout

    # Banded conv weights (bf16) + BN affine terms kept in f32 for the epilogue.
    w_band = _banded_weights(w, W)
    scale = (gamma / jnp.sqrt(run_var + eps)).astype(jnp.float32)
    fused_bias = ((b - run_mean) * scale + beta).astype(jnp.float32)
    scale_t = jnp.tile(scale, W).reshape(1, WCout)
    bias_t = jnp.tile(fused_bias, W).reshape(1, WCout)

    # Generation-aware VMEM limit (v7x has 64 MiB/TC vs 128 MiB on v5e/v6e).
    try:
        info = pltpu.get_tpu_info()
        vmem_cap = int(getattr(info, "vmem_capacity_bytes", 128 * 1024 * 1024))
    except Exception:  # pragma: no cover - conservative fallback
        vmem_cap = 128 * 1024 * 1024
    vmem_limit = min(48 * 1024 * 1024, (vmem_cap * 3) // 5)

    # VMEM budget with *padded* shapes (lane dim -> 128, sublane -> 8/16).
    fixed = (2 * _padded_bytes(w_band.shape, jnp.bfloat16)
             + 4 * _padded_bytes((1, WCout), jnp.float32))
    headroom = 2 * 1024 * 1024                      # compiler internal scratch
    budget = max(vmem_limit - fixed - headroom, 1)

    def per_step(bt):
        return (2 * _padded_bytes((bt, H, WCin), jnp.bfloat16)    # in, double-buffered
                + 2 * _padded_bytes((bt, H, WCout), out_dtype)    # out, double-buffered
                + _padded_bytes((bt, H, WCout), jnp.float32))     # f32 accumulator

    Bt = _pick_block_batch(B, per_step, budget, min_steps=min(B, 8))

    out = pl.pallas_call(
        _conv1x3x3_bn_relu_kernel,
        out_shape=jax.ShapeDtypeStruct((B, H, WCout), out_dtype),
        grid=(B // Bt,),
        in_specs=[
            pl.BlockSpec((Bt, H, WCin), lambda i: (i, 0, 0)),
            pl.BlockSpec((WCin, 3 * WCout), lambda i: (0, 0)),
            pl.BlockSpec((1, WCout), lambda i: (0, 0)),
            pl.BlockSpec((1, WCout), lambda i: (0, 0)),
        ],
        out_specs=pl.BlockSpec((Bt, H, WCout), lambda i: (i, 0, 0)),
        scratch_shapes=[pltpu.VMEM((Bt, H, WCout), jnp.float32)],
        compiler_params=pltpu.CompilerParams(
            dimension_semantics=("parallel",),
            vmem_limit_bytes=vmem_limit),
    )(x_lane.astype(jnp.bfloat16), w_band, scale_t, bias_t)
    return out


def conv_1x3x3_forward(x, w, b, gamma, beta, run_mean, run_var, eps=1e-5):
    """PyTorch-parity wrapper.  x: (N, Cin, D, H, W) f32; w: (Cout, Cin, 1, 3, 3)."""
    N, Cin, D, H, W_ = x.shape
    Cout = w.shape[0]
    B = N * D

    # TODO(synk): in the full EquiUnet keep activations in the lane-dense
    # channels-last layout across HDC_module1 blocks so these two transposes
    # (a full extra HBM pass each) only happen at the network boundary.
    x_lane = jnp.transpose(x, (0, 2, 3, 4, 1)).reshape(B, H, W_ * Cin)

    out = conv_1x3x3_bn_relu_lane_dense(
        x_lane, w, b, gamma, beta, run_mean, run_var,
        W=W_, eps=eps, out_dtype=x.dtype)

    # (B, H, W*Cout) -> (N, Cout, D, H, W): keep the PyTorch module interface.
    return out.reshape(N, D, H, W_, Cout).transpose(0, 4, 1, 2, 3)


# ---------------------------------------------------------------------------
# Pure-JAX reference + test
# ---------------------------------------------------------------------------
def reference_forward(x, w, b, gamma, beta, run_mean, run_var, eps=1e-5):
    y = jax.lax.conv_general_dilated(
        x, w, window_strides=(1, 1, 1),
        padding=((0, 0), (1, 1), (1, 1)),
        dimension_numbers=("NCDHW", "OIDHW", "NCDHW"))
    y = y + b[None, :, None, None, None]
    scale = gamma / jnp.sqrt(run_var + eps)
    shift = beta - run_mean * scale
    y = y * scale[None, :, None, None, None] + shift[None, :, None, None, None]
    return jnp.maximum(y, 0.0)


if __name__ == "__main__":
    # Conv_1x3x3 inside HDC_module1 has inplanes == outplanes (= midplanes // 4).
    N, Cin, Cout, D, H, W = 2, 8, 8, 4, 16, 16
    key = jax.random.PRNGKey(0)
    kx, kw, kb, kg, kbe, km, kv = jax.random.split(key, 7)

    x = jax.random.normal(kx, (N, Cin, D, H, W), jnp.float32)
    w = jax.random.normal(kw, (Cout, Cin, 1, 3, 3), jnp.float32) * 0.1
    b = jax.random.normal(kb, (Cout,), jnp.float32) * 0.1
    gamma = 1.0 + 0.1 * jax.random.normal(kg, (Cout,), jnp.float32)
    beta = 0.1 * jax.random.normal(kbe, (Cout,), jnp.float32)
    run_mean = 0.1 * jax.random.normal(km, (Cout,), jnp.float32)
    run_var = jnp.abs(jax.random.normal(kv, (Cout,), jnp.float32)) + 0.5

    out = jax.block_until_ready(
        conv_1x3x3_forward(x, w, b, gamma, beta, run_mean, run_var))
    ref = reference_forward(x, w, b, gamma, beta, run_mean, run_var)

    assert out.shape == (N, Cout, D, H, W)
    # bf16 MXU inputs vs pure-f32 reference -> loosened tolerance.
    assert jnp.allclose(out, ref, atol=5e-2, rtol=5e-2), \
        float(jnp.max(jnp.abs(out - ref)))
    print("KERNEL_OK")
</pallas_src>

<mosaic_0001>
module attributes {stable_mosaic.version = 11 : i64} {
  func.func @_conv1x3x3_bn_relu_kernel(%arg0: i32, %arg1: memref<1x16x128xbf16, #tpu.memory_space<vmem>>, %arg2: memref<128x384xbf16, #tpu.memory_space<vmem>>, %arg3: memref<1x128xf32, #tpu.memory_space<vmem>>, %arg4: memref<1x128xf32, #tpu.memory_space<vmem>>, %arg5: memref<1x16x128xf32, #tpu.memory_space<vmem>>, %arg6: memref<1x16x128xf32, #tpu.memory_space<vmem>>) attributes {dimension_semantics = [#tpu.dimension_semantics<parallel>], iteration_bounds = array<i64: 8>, scalar_prefetch = 0 : i64, scratch_operands = 1 : i64, tpu.core_type = #tpu.core_type<tc>, window_params = [{transform_indices = @transform_0, window_bounds = array<i64: 1, 16, 128>}, {pipeline_mode = #tpu.pipeline_mode<synchronous>, transform_indices = @transform_1, window_bounds = array<i64: 128, 384>}, {pipeline_mode = #tpu.pipeline_mode<synchronous>, transform_indices = @transform_2, window_bounds = array<i64: 1, 128>}, {pipeline_mode = #tpu.pipeline_mode<synchronous>, transform_indices = @transform_3, window_bounds = array<i64: 1, 128>}, {transform_indices = @transform_4, window_bounds = array<i64: 1, 16, 128>}]} {
    %c0 = arith.constant 0 : index
    %c0_0 = arith.constant 0 : index
    %c0_1 = arith.constant 0 : index
    %0 = vector.load %arg1[%c0, %c0_0, %c0_1] : memref<1x16x128xbf16, #tpu.memory_space<vmem>>, vector<1x16x128xbf16>
    %1 = vector.shape_cast %0 : vector<1x16x128xbf16> to vector<16x128xbf16>
    %c0_2 = arith.constant 0 : index
    %c0_3 = arith.constant 0 : index
    %2 = vector.load %arg2[%c0_2, %c0_3] : memref<128x384xbf16, #tpu.memory_space<vmem>>, vector<128x384xbf16>
    %cst = arith.constant dense<0.000000e+00> : vector<16x384xf32>
    %3 = tpu.matmul %1, %2, %cst {dimension_numbers = #tpu.dot_dimension_numbers<[1], [0], [0], [1], [0, 0, 1, 1], [], []>} : vector<16x128xbf16>, vector<128x384xbf16>, vector<16x384xf32> -> vector<16x384xf32>
    %4 = vector.shape_cast %3 : vector<16x384xf32> to vector<1x16x384xf32>
    %5 = vector.extract_strided_slice %4 {offsets = [0, 0, 128], sizes = [1, 16, 128], strides = [1, 1, 1]} : vector<1x16x384xf32> to vector<1x16x128xf32>
    %c0_4 = arith.constant 0 : index
    %c0_5 = arith.constant 0 : index
    %c0_6 = arith.constant 0 : index
    %6 = vector.load %arg6[%c0_4, %c0_5, %c0_6] : memref<1x16x128xf32, #tpu.memory_space<vmem>>, vector<1x16x128xf32>
    tpu.vector_store %arg6[%c0_4, %c0_5, %c0_6], %5 {strides = array<i32>} : memref<1x16x128xf32, #tpu.memory_space<vmem>>, vector<1x16x128xf32>,
    %c0_7 = arith.constant 0 : index
    %c1 = arith.constant 1 : index
    %c0_8 = arith.constant 0 : index
    %7 = vector.load %arg6[%c0_7, %c1, %c0_8] : memref<1x16x128xf32, #tpu.memory_space<vmem>>, vector<1x15x128xf32>
    %8 = vector.extract_strided_slice %4 {offsets = [0, 0, 0], sizes = [1, 15, 128], strides = [1, 1, 1]} : vector<1x16x384xf32> to vector<1x15x128xf32>
    %9 = arith.addf %7, %8 : vector<1x15x128xf32>
    %c0_9 = arith.constant 0 : index
    %c1_10 = arith.constant 1 : index
    %c0_11 = arith.constant 0 : index
    %10 = vector.load %arg6[%c0_9, %c1_10, %c0_11] : memref<1x16x128xf32, #tpu.memory_space<vmem>>, vector<1x15x128xf32>
    tpu.vector_store %arg6[%c0_9, %c1_10, %c0_11], %9 {strides = array<i32>} : memref<1x16x128xf32, #tpu.memory_space<vmem>>, vector<1x15x128xf32>,
    %c0_12 = arith.constant 0 : index
    %c0_13 = arith.constant 0 : index
    %c0_14 = arith.constant 0 : index
    %11 = vector.load %arg6[%c0_12, %c0_13, %c0_14] : memref<1x16x128xf32, #tpu.memory_space<vmem>>, vector<1x15x128xf32>
    %12 = vector.extract_strided_slice %4 {offsets = [0, 1, 256], sizes = [1, 15, 128], strides = [1, 1, 1]} : vector<1x16x384xf32> to vector<1x15x128xf32>
    %13 = arith.addf %11, %12 : vector<1x15x128xf32>
    %c0_15 = arith.constant 0 : index
    %c0_16 = arith.constant 0 : index
    %c0_17 = arith.constant 0 : index
    %14 = vector.load %arg6[%c0_15, %c0_16, %c0_17] : memref<1x16x128xf32, #tpu.memory_space<vmem>>, vector<1x15x128xf32>
    tpu.vector_store %arg6[%c0_15, %c0_16, %c0_17], %13 {strides = array<i32>} : memref<1x16x128xf32, #tpu.memory_space<vmem>>, vector<1x15x128xf32>,
    %c0_18 = arith.constant 0 : index
    %c0_19 = arith.constant 0 : index
    %c0_20 = arith.constant 0 : index
    %15 = vector.load %arg6[%c0_18, %c0_19, %c0_20] : memref<1x16x128xf32, #tpu.memory_space<vmem>>, vector<1x16x128xf32>
    %c0_21 = arith.constant 0 : index
    %c0_22 = arith.constant 0 : index
    %16 = vector.load %arg3[%c0_21, %c0_22] : memref<1x128xf32, #tpu.memory_space<vmem>>, vector<1x128xf32>
    %17 = vector.shape_cast %16 : vector<1x128xf32> to vector<1x1x128xf32>
    %18 = vector.broadcast %17 : vector<1x1x128xf32> to vector<1x16x128xf32>
    %19 = arith.mulf %15, %18 : vector<1x16x128xf32>
    %c0_23 = arith.constant 0 : index
    %c0_24 = arith.constant 0 : index
    %20 = vector.load %arg4[%c0_23, %c0_24] : memref<1x128xf32, #tpu.memory_space<vmem>>, vector<1x128xf32>
    %21 = vector.shape_cast %20 : vector<1x128xf32> to vector<1x1x128xf32>
    %22 = vector.broadcast %21 : vector<1x1x128xf32> to vector<1x16x128xf32>
    %23 = arith.addf %19, %22 : vector<1x16x128xf32>
    %cst_25 = arith.constant 0.000000e+00 : f32
    %24 = vector.broadcast %cst_25 : f32 to vector<1x16x128xf32>
    %25 = arith.maximumf %23, %24 : vector<1x16x128xf32>
    %c0_26 = arith.constant 0 : index
    %c0_27 = arith.constant 0 : index
    %c0_28 = arith.constant 0 : index
    %26 = vector.load %arg5[%c0_26, %c0_27, %c0_28] : memref<1x16x128xf32, #tpu.memory_space<vmem>>, vector<1x16x128xf32>
    tpu.vector_store %arg5[%c0_26, %c0_27, %c0_28], %25 {strides = array<i32>} : memref<1x16x128xf32, #tpu.memory_space<vmem>>, vector<1x16x128xf32>,
    return
  }
  func.func @transform_0(%arg0: i32) -> (i32, i32, i32) {
    %c0_i32 = arith.constant 0 : i32
    %c0_i32_0 = arith.constant 0 : i32
    %c0_i32_1 = arith.constant 0 : i32
    return %arg0, %c0_i32, %c0_i32_0 : i32, i32, i32
  }
  func.func @transform_1(%arg0: i32) -> (i32, i32) {
    %c0_i32 = arith.constant 0 : i32
    %c0_i32_0 = arith.constant 0 : i32
    %c0_i32_1 = arith.constant 0 : i32
    return %c0_i32, %c0_i32_0 : i32, i32
  }
  func.func @transform_2(%arg0: i32) -> (i32, i32) {
    %c0_i32 = arith.constant 0 : i32
    %c0_i32_0 = arith.constant 0 : i32
    %c0_i32_1 = arith.constant 0 : i32
    return %c0_i32, %c0_i32_0 : i32, i32
  }
  func.func @transform_3(%arg0: i32) -> (i32, i32) {
    %c0_i32 = arith.constant 0 : i32
    %c0_i32_0 = arith.constant 0 : i32
    %c0_i32_1 = arith.constant 0 : i32
    return %c0_i32, %c0_i32_0 : i32, i32
  }
  func.func @transform_4(%arg0: i32) -> (i32, i32, i32) {
    %c0_i32 = arith.constant 0 : i32
    %c0_i32_0 = arith.constant 0 : i32
    %c0_i32_1 = arith.constant 0 : i32
    return %arg0, %c0_i32, %c0_i32_0 : i32, i32, i32
  }
}

</mosaic_0001>

<bundles_post_ra>
// kernel: tpu_custom_call.1
= control target key start
LH: loop header
LB: loop body
LE: loop exit
PB: predicated region body
PF: predicated region fallthrough
CT: control target
= control target key end

     0   :  { %9 = vsyncpa [#allocation4], 0  ;;  %s1169_s0 = inlined_call_operand.hbm [shape: bf16[8,16,128], index: 0, kind: input, shape index: {}]   ;;  %s1170_s1 = inlined_call_operand.hbm [shape: bf16[128,384], index: 1, kind: input, shape index: {}]   ;;  %s1171_s2 = inlined_call_operand.vmem [shape: f32[1,128], index: 2, kind: input, shape index: {}]   ;;  %s1172_s3 = inlined_call_operand.vmem [shape: f32[1,128], index: 3, kind: input, shape index: {}]   ;;  %s1173_s4 = inlined_call_operand.hbm [shape: f32[8,16,128], index: 4, kind: output, shape index: {}]  }
   0x1   :  { %11 = vsyncpa [#allocation4 + $0x1], 0 }
   0x2   :  { %12 = vsyncpa [#allocation7], 0 }
   0x3   :  { %13 = vsyncpa [#allocation5], 0 }
   0x4   :  { %15 = vsyncpa [#allocation5 + $0x1], 0  ;;  %s967_s15 = smov 0   ;;  %s969_s16 = smov 0  }
   0x5   :  { %s971_s17 = smov 0   ;;  %s973_s18 = smov 0  }
   0x6 LB: > { %s988_s19 = sadd.s32 4294967295, %s928_s18   ;;  %s627_s20 = sadd.s32 4294967294, %s928_s18   ;;  %s928_s18 = sphi %s973_s18, %s1192_s18   ;;  %s924_s17 = sphi %s971_s17, %s1191_s17   ;;  %s920_s16 = sphi %s969_s16, %s1190_s16   ;;  %s916_s15 = sphi %s967_s15, %s1189_s15  }
   0x7   : > { %p41_p0 = scmp.ne.s32.totalorder %s920_s16, %s916_s15  ;;  %p1174_p1 = scmp.eq.s32.totalorder %s988_s19, 0 }
   0x8   : > { %p134_p3 = scmp.eq.s32.totalorder %s627_s20, 7  ;;  %p628_p5 = scmp.ge.s32.totalorder %s928_s18, 1 }
   0x9   : > { %p997_p4 = por %p1174_p1, %p41_p0  ;;  %p141_p7 = scmp.lt.s32.totalorder %s928_s18, 9 }
   0xa   : > { %p1002_p6 = por %p134_p3, %p41_p0  ;;  %s930_s24 = smov [#allocation6]  }
   0xb   : > { %s1177_s21 = scalar_select %p997_p4, 1, 0 }
   0xc   : > { %s1178_s22 = scalar_select %p1002_p6, 1, 0 }
   0xd   : > { %p1007_p8 = pnand %p628_p5, %p141_p7  ;;  %s153_s25 = sshll.u32 %s930_s24, 4  ;;  %s154_s25 = int_to_ptr.vmem [resolvable:$true] %s153_s25 }
   0xe   : > { %s1020_s27 = sadd.s32 1, %s928_s18   ;;  %s28_s28 = sadd.s32 1, %s924_s17 }
   0xf   : > { %s1179_s23 = scalar_select %p1007_p8, 1, 0 }
  0x10   : > { %p709_p9 = pneg %p1007_p8  ;;  %s25_s29 = ssub.s32 %s928_s18, %s1020_s27 }
  0x11   : > { %s800_s6 = scalar_lea.hbm %s1170_s1, 3072 }
  0x12   : > { %p1015_p10 = pnand %p709_p9, %p1174_p1  ;;  %p801_p11 = scmp.ne.s32.totalorder %s1170_s1, %s800_s6 }
  0x13   : > { %p807_p3 = scmp.lt.u32.totalorder %s800_s6, %s1170_s1 }
  0x14   : > { %p802_p12 = pneg %p1015_p10 }
  0x16   : > { %p803_p13 = pnand %p802_p12, %p801_p11 }
  0x18   : > { %p804_p0 = pneg %p803_p13 }
  0x1a   : > { %p809_p5 = pnand %p807_p3, %p804_p0 }
  0x1c   : > { %812 = shalt.err (!%p809_p5)
}
  0x1d   : > { %s813_s11 = scalar_lea.vmem %s154_s25, 3072  ;;  %p821_p2 = scmp.lt.s32.totalorder %s154_s25, %s154_s25 }
  0x1e   : > { %p814_p7 = scmp.ne.s32.totalorder %s154_s25, %s813_s11  ;;  %p822_p6 = scmp.lt.s32.totalorder %s813_s11, %s813_s11 }
  0x20   : > { %p816_p9 = pnand %p814_p7, %p802_p12  ;;  %p823_p4 = por %p822_p6, %p821_p2 }
  0x22   : > { %p817_p1 = pneg %p816_p9 }
  0x24   : > { %p824_p8 = pnand %p823_p4, %p817_p1 }
  0x26   : > { %827 = shalt.err (!%p824_p8)
}
  0x27   : > { %s931_s12 = smov 192   ;;  %s932_s13 = smov 12  }
  0x28   : > { %712 = dma.hbm_to_vmem [thread:$0]  (!%p1015_p10), %s1170_s1, 3072, %s154_s25, [#allocation7], %s931_s12, %s931_s12, %s932_s13  }
  0x29   : > { %p26_p11 = scmp.eq.s32.totalorder %s25_s29, 0  ;;  %p35_p2 = scmp.ne.s32.totalorder %s924_s17, %s920_s16 }
  0x2a   : > { %p36_p1 = scmp.eq.s32.totalorder %s928_s18, 0  ;;  %p722_p4 = scmp.lt.s32.totalorder %s928_s18, 8 }
  0x2b   : > { %s1046_s24 = scalar_select %p26_p11, %s924_s17, %s28_s28  }
  0x2c   : > { %p37_p6 = por %p36_p1, %p35_p2  ;;  %p1181_p8 = scmp.eq.s32.totalorder %s988_s19, 7 }
  0x2d   : > { %s173_s5 = sand.u32 1, %s924_s17   ;;  %s670_s6 = sshll.u32 %s928_s18, 7 }
  0x2e   : > { %p1050_p12 = por %p1181_p8, %p35_p2  ;;  %s631_s7 = sshll.u32 %s173_s5, 3 }
  0x2f   : > { %s1059_s9 = scalar_lea.hbm %s1169_s0, %s670_s6  ;;  %s177_s25 = scalar_lea.vmem [#allocation3], %s631_s7 }
  0x30   : > { %s184_s28 = sshll.u32 %s177_s25, 4  ;;  %p1061_p10 = pnand %p722_p4, %p37_p6  ;;  %s1065_s28 = int_to_ptr.vmem [resolvable:$true] %s184_s28 }
  0x31   : > { %s1067_s10 = scalar_lea.sflag [#allocation4], %s173_s5  ;;  %s828_s11 = scalar_lea.hbm %s1059_s9, 128 }
  0x32   : > { %p829_p13 = scmp.ne.s32.totalorder %s1059_s9, %s828_s11  ;;  %p830_p0 = pneg %p1061_p10 }
  0x33   : > { %s833_s14 = scalar_lea.hbm %s1169_s0, 1024  ;;  %p834_p7 = scmp.lt.u32.totalorder %s1059_s9, %s1169_s0 }
  0x34   : > { %p831_p3 = pnand %p830_p0, %p829_p13  ;;  %p835_p9 = scmp.lt.u32.totalorder %s833_s14, %s828_s11 }
  0x35   : > { %p837_p2 = scmp.lt.u32.totalorder %s828_s11, %s1059_s9 }
  0x36   : > { %p832_p5 = pneg %p831_p3  ;;  %p836_p11 = por %p835_p9, %p834_p7 }
  0x38   : > { %p838_p1 = por %p837_p2, %p836_p11 }
  0x3a   : > { %p839_p4 = pnand %p838_p1, %p832_p5 }
  0x3c   : > { %842 = shalt.err (!%p839_p4)
}
  0x3d   : > { %s843_s5 = scalar_lea.vmem %s1065_s28, 128  ;;  %s933_s7 = smov [#allocation3]  }
  0x3e   : > { %p844_p6 = scmp.ne.s32.totalorder %s1065_s28, %s843_s5  ;;  %s848_s26 = sshll.u32 %s933_s7, 4  ;;  %s849_s26 = int_to_ptr.vmem [resolvable:$false] %s848_s26 }
  0x3f   : > { %s850_s8 = scalar_lea.vmem %s849_s26, 256  ;;  %p851_p3 = scmp.lt.s32.totalorder %s1065_s28, %s849_s26 }
  0x40   : > { %p846_p8 = pnand %p844_p6, %p830_p0  ;;  %p852_p7 = scmp.lt.s32.totalorder %s850_s8, %s843_s5 }
  0x42   : > { %p847_p13 = pneg %p846_p8  ;;  %p853_p9 = por %p852_p7, %p851_p3 }
  0x44   : > { %p854_p11 = pnand %p853_p9, %p847_p13 }
  0x46   : > { %857 = shalt.err (!%p854_p11)
}
  0x47   : > { %s934_s25 = smov 64   ;;  %s935_s11 = smov 4  }
  0x48   : > { %716 = dma.hbm_to_vmem [thread:$0]  (!%p1061_p10), %s1059_s9, 128, %s1065_s28, %s1067_s10, %s934_s25, %s934_s25, %s935_s11  }
  0x49   : > { %p1184_p0 = scmp.ne.s32.totalorder %s1179_s23, 0 }
  0x4a   : > { %s1098_s12 = sand.u32 (!%p1184_p0), 1, %s920_s16   ;;  %p1185_p5 = scmp.ne.s32.totalorder (!%p1184_p0), %s1177_s21, 0 }
  0x4b   : > { %196 = sbr.rel (%p1184_p0) target bundleno = 384 (0x180), region = 36  ;;  %s635_s13 = sshll.u32 (!%p1184_p0), %s1098_s12, 3 }
  0x4c   : > { %s199_s14 = scalar_lea.sflag (!%p1184_p0), [#allocation4], %s1098_s12  ;;  %s1102_s20 = scalar_lea.vmem (!%p1184_p0), [#allocation3], %s635_s13 }
  0x52   : > { %903 = dma.done.wait (%p1185_p5), %s199_s14, 128  }
  0x53   : > { %905 = vsyncadd (%p1185_p5), %s199_s14, 4294967168  ;;  %p1186_p10 = scmp.eq.s32.totalorder %s988_s19, 0 }
  0x55   : > { %907 = dma.done.wait (%p1186_p10), [#allocation7], 3072   ;;  %p1187_p2 = pmov %p1186_p10 }
  0x56   : > { %v936_v0 = vmov 0.0   ;;  %v937_v1 = vmov 0   ;;  %vm938_vm0 = vmmov 0   ;;  %v767_v2 = vld [vmem:[#allocation6 + $0x4] ss:$12 sps:$4 sm:$0xff]   ;;  %vm496_vm1 = vcmask 1046528  }
  0x57   : > { %909 = vsyncadd (%p1187_p2), [#allocation7], 4294964224  ;;  %681 = vmatprep.subr.bf16.mxu1 %v936_v0  ;;  %432 = vmatprep.mubr.bf16.mxu0 %v937_v1  ;;  %v769_v3 = vld [vmem:[#allocation6] ss:$12 sps:$4 sm:$0xff]   ;;  %v770_v4 = vld [vmem:[#allocation6 + $0x1c] ss:$12 sps:$4 sm:$0xff]  }
  0x58   : > { %697 = vmatprep.mubr.msk.bf16.mxu1 %vm938_vm0, %v936_v0  ;;  %400 = vmatprep.subr.bf16.mxu0 %v767_v2  ;;  %v772_v5 = vld [vmem:[#allocation6 + $0x18] ss:$12 sps:$4 sm:$0xff]   ;;  %v773_v6 = vld [vmem:[#allocation6 + $0x34] ss:$12 sps:$4 sm:$0xff]   ;;  %v775_v8 = vld [vmem:[#allocation6 + $0x30] ss:$12 sps:$4 sm:$0xff]  }
  0x59   : > { %401 = vmatpush1.bf16.msra.mxu0 %v769_v3  ;;  %v779_v7 = vld [vmem:[#allocation6 + $0x8] ss:$12 sps:$4 sm:$0xff]   ;;  %v776_v9 = vld [vmem:[#allocation6 + $0x4c] ss:$12 sps:$4 sm:$0xff]   ;;  %v780_v12 = vld [vmem:[#allocation6 + $0x64] ss:$12 sps:$4 sm:$0xff]  }
  0x5a   : > { %402 = vmatprep.subr.bf16.mxu0 %v770_v4  ;;  %682 = vmatpush3.bf16.msra.mxu1 %v779_v7  ;;  %v783_v10 = vld [vmem:[#allocation6 + $0x20] ss:$12 sps:$4 sm:$0xff]   ;;  %v778_v11 = vld [vmem:[#allocation6 + $0x48] ss:$12 sps:$4 sm:$0xff]   ;;  %v787_v13 = vld [vmem:[#allocation6 + $0x38] ss:$12 sps:$4 sm:$0xff]  }
  0x5b   : > { %683 = vmatprep.subr.bf16.mxu1 %v936_v0  ;;  %v782_v14 = vld [vmem:[#allocation6 + $0x60] ss:$12 sps:$4 sm:$0xff]   ;;  %v784_v15 = vld [vmem:[#allocation6 + $0x7c] ss:$12 sps:$4 sm:$0xff]   ;;  %v786_v17 = vld [vmem:[#allocation6 + $0x78] ss:$12 sps:$4 sm:$0xff]  }
  0x5c   : > { %v791_v16 = vld [vmem:[#allocation6 + $0x50] ss:$12 sps:$4 sm:$0xff]   ;;  %v788_v18 = vld [vmem:[#allocation6 + $0x94] ss:$12 sps:$4 sm:$0xff]   ;;  %v792_v21 = vld [vmem:[#allocation6 + $0xac] ss:$12 sps:$4 sm:$0xff]  }
  0x5d   : > { %403 = vmatpush1.bf16.msra.mxu0 %v772_v5  ;;  %v795_v19 = vld [vmem:[#allocation6 + $0x68] ss:$12 sps:$4 sm:$0xff]   ;;  %v790_v20 = vld [vmem:[#allocation6 + $0x90] ss:$12 sps:$4 sm:$0xff]   ;;  %v797_v22 = vld [vmem:[#allocation6 + $0x80] ss:$12 sps:$4 sm:$0xff]  }
  0x5e   : > { %404 = vmatprep.subr.bf16.mxu0 %v773_v6  ;;  %684 = vmatpush3.bf16.msra.mxu1 %v783_v10  ;;  %v794_v23 = vld [vmem:[#allocation6 + $0xa8] ss:$12 sps:$4 sm:$0xff]   ;;  %v798_v24 = vld [vmem:[#allocation6 + $0x98] ss:$12 sps:$4 sm:$0xff]   ;;  %v799_v26 = vld [vmem:[#allocation6 + $0xb0] ss:$12 sps:$4 sm:$0xff]  }
  0x5f   : > { %685 = vmatprep.subr.bf16.mxu1 %v936_v0  ;;  %v796_v25 = vld [vmem:[%s1102_s20] sm:$0xff]   ;;  %v663_v44 = vld [vmem:[%s1171_s2] ss:$0 sm:$0xff]  ;;  %s637_s29 = sshll.u32 %s1098_s12, 4  ;;  %s671_s6 = sshll.u32 %s988_s19, 8 }
  0x60   : > { %v664_v47 = vld [vmem:[%s1172_s3] ss:$0 sm:$0xff]  ;;  %s230_s10 = scalar_lea.vmem [#allocation8], %s637_s29  ;;  %s1124_s8 = scalar_lea.hbm %s1173_s4, %s671_s6 }
  0x61   : > { %405 = vmatpush1.bf16.msra.mxu0 %v775_v8  ;;  %s544_s5 = sshll.u32 %s230_s10, 4  ;;  %s531_s25 = scalar_lea.sflag [#allocation5], %s1098_s12  ;;  %s1126_s5 = int_to_ptr.vmem [resolvable:$true] %s544_s5 }
  0x62   : > { %406 = vmatprep.subr.bf16.mxu0 %v776_v9  ;;  %686 = vmatpush3.bf16.msra.mxu1 %v787_v13  ;;  %s858_s11 = scalar_lea.vmem %s1126_s5, 256  ;;  %s939_s19 = smov [#allocation8]  }
  0x63   : > { %687 = vmatprep.subr.bf16.mxu1 %v936_v0  ;;  %p859_p1 = scmp.ne.s32.totalorder %s1126_s5, %s858_s11  ;;  %s862_s13 = sshll.u32 %s939_s19, 4  ;;  %s863_s13 = int_to_ptr.vmem [resolvable:$false] %s862_s13 }
  0x64   : > { %s864_s14 = scalar_lea.vmem %s863_s13, 512  ;;  %p865_p8 = scmp.lt.s32.totalorder %s1126_s5, %s863_s13 }
  0x65   : > { %407 = vmatpush1.bf16.msra.mxu0 %v778_v11  ;;  %p860_p4 = pnand %p859_p1, %p1050_p12  ;;  %p866_p13 = scmp.lt.s32.totalorder %s864_s14, %s858_s11 }
  0x66   : > { %408 = vmatprep.subr.bf16.mxu0 %v780_v12  ;;  %688 = vmatpush3.bf16.msra.mxu1 %v791_v16 }
  0x67   : > { %689 = vmatprep.subr.bf16.mxu1 %v936_v0  ;;  %p861_p6 = pneg %p860_p4  ;;  %p867_p3 = por %p866_p13, %p865_p8 }
  0x69   : > { %409 = vmatpush1.bf16.msra.mxu0 %v782_v14  ;;  %p868_p7 = pnand %p867_p3, %p861_p6 }
  0x6a   : > { %410 = vmatprep.subr.bf16.mxu0 %v784_v15  ;;  %690 = vmatpush3.bf16.msra.mxu1 %v795_v19 }
  0x6b   : > { %691 = vmatprep.subr.bf16.mxu1 %v936_v0 }
  0x6d   : > { %411 = vmatpush1.bf16.msra.mxu0 %v786_v17 }
  0x6e   : > { %412 = vmatprep.subr.bf16.mxu0 %v788_v18  ;;  %692 = vmatpush3.bf16.msra.mxu1 %v797_v22 }
  0x6f   : > { %693 = vmatprep.subr.bf16.mxu1 %v936_v0 }
  0x71   : > { %413 = vmatpush1.bf16.msra.mxu0 %v790_v20 }
  0x72   : > { %414 = vmatprep.subr.bf16.mxu0 %v792_v21  ;;  %694 = vmatpush3.bf16.msra.mxu1 %v798_v24 }
  0x73   : > { %695 = vmatprep.subr.bf16.mxu1 %v936_v0 }
  0x75   : > { %415 = vmatpush1.bf16.msra.mxu0 %v794_v23 }
  0x76   : > { %696 = vmatpush3.bf16.msra.mxu1 %v799_v26 }
  0x78   : > { %433 = vmatmul.mubr.bf16.vlgmr.msra.gmra.mrb[0].mxu0 %v796_v25 }
  0x79   : > { %698 = vmatmul.mubr.bf16.vlgmr.msra.gmra.mrb[0].mxu1 %v796_v25 }
 0x14b   : > { %v434_v27 = vpop.f32.mrb[0].mxu0 }
 0x14c   : > { %v436_v28 = vpop.f32.mrb[1].mxu0  ;;  %v477_v31 = vpop.f32.mrb[0].mxu1 }
 0x14d   : > { %484 = vst [vmem:[#allocation2] sm:$0xff] %v436_v28  ;;  %v438_v29 = vpop.f32.mrb[2].mxu0  ;;  %v497_v32 = vrot.slane %v477_v31, 1  ;;  %v699_v33 = vpop.f32.mrb[1].mxu1 }
 0x14e   : > { %v440_v30 = vpop.f32.mrb[3].mxu0  ;;  %v480_v34 = vpop.f32.mrb[2].mxu1 }
 0x14f   : > { %485 = vst [vmem:[#allocation2 + $0x8] sm:$0xff] %v440_v30  ;;  %v498_v35 = vrot.slane %v480_v34, 1  ;;  %v700_v36 = vpop.f32.mrb[3].mxu1 }
 0x151   : > { %v499_v37 = vsel %vm496_vm1, %v497_v32, %v498_v35 }
 0x156   : > { %v486_v38 = vld [vmem:[#allocation2 + $0x1] sm:$0xff]  ;;  %v487_v39 = vld [vmem:[#allocation2 + $0x9] sm:$0x7f] }
 0x157   : > { %v488_v40 = vadd.f32 %v486_v38, %v434_v27  ;;  %v489_v41 = vadd.f32 %v487_v39, %v438_v29 }
 0x159   : > { %490 = vst [vmem:[#allocation2 + $0x1] sm:$0xff] %v488_v40  ;;  %491 = vst [vmem:[#allocation2 + $0x9] sm:$0x7f] %v489_v41 }
 0x160   : > { %v492_v42 = vld [vmem:[#allocation2] sm:$0xff]  ;;  %v493_v43 = vld [vmem:[#allocation2 + $0x8] sm:$0x7f] }
 0x161   : > { %v502_v45 = vadd.f32 %v499_v37, %v492_v42  ;;  %v503_v46 = vadd.f32 %v498_v35, %v493_v43 }
 0x163   : > { %504 = vst [vmem:[#allocation2] sm:$0xff] %v502_v45  ;;  %505 = vst [vmem:[#allocation2 + $0x8] sm:$0x7f] %v503_v46  ;;  %v515_v48 = vmul.f32 %v663_v44, %v502_v45 }
 0x165   : > { %v524_v49 = vadd.f32 %v664_v47, %v515_v48 }
 0x167   : > { %v526_v50 = vmax.f32 %v524_v49, 0.0 }
 0x169   : > { %528 = vst [vmem:[%s230_s10] sm:$0xff] %v526_v50 }
 0x16a   : > { %v507_v51 = vld [vmem:[#allocation2 + $0x8] sm:$0xff] }
 0x16b   : > { %v516_v52 = vmul.f32 %v663_v44, %v507_v51 }
 0x16d   : > { %v525_v53 = vadd.f32 %v664_v47, %v516_v52 }
 0x16f   : > { %v527_v54 = vmax.f32 %v525_v53, 0.0 }
 0x171   : > { %529 = vst [vmem:[%s230_s10 + $0x8] sm:$0xff] %v527_v54 }
 0x172   : > { %871 = shalt.err (!%p868_p7)
}
 0x173   : > { %s872_s20 = scalar_lea.hbm %s1124_s8, 256  ;;  %s876_s9 = scalar_lea.hbm %s1173_s4, 2048 }
 0x174   : > { %p873_p9 = scmp.ne.s32.totalorder %s1124_s8, %s872_s20  ;;  %p877_p5 = scmp.lt.u32.totalorder %s1124_s8, %s1173_s4 }
 0x175   : > { %p878_p10 = scmp.lt.u32.totalorder %s876_s9, %s872_s20  ;;  %p880_p1 = scmp.lt.u32.totalorder %s872_s20, %s1124_s8 }
 0x176   : > { %p874_p11 = pnand %p873_p9, %p1050_p12 }
 0x177   : > { %p879_p2 = por %p878_p10, %p877_p5 }
 0x178   : > { %p875_p0 = pneg %p874_p11 }
 0x179   : > { %p881_p4 = por %p880_p1, %p879_p2 }
 0x17b   : > { %p882_p6 = pnand %p881_p4, %p875_p0 }
 0x17d   : > { %885 = shalt.err (!%p882_p6)
}
 0x17e   : > { %s940_s10 = smov 128   ;;  %s941_s6 = smov 8  }
 0x17f   : > { %707 = dma.vmem_to_hbm [thread:$0]  (%p1050_p12), %s1126_s5, 256, %s1124_s8, %s531_s25, %s940_s10, %s940_s10, %s941_s6  }
 0x180 PF: > { %p724_p8 = scmp.ge.s32.totalorder %s928_s18, 2  ;;  %s559_s7 = sand.u32 1, %s916_s15  }
 0x181   : > { %p1188_p13 = scmp.ne.s32.totalorder %s1178_s22, 0  ;;  %s560_s26 = scalar_lea.sflag [#allocation5], %s559_s7 }
 0x183   : > { %p718_p3 = pnand %p724_p8, %p1188_p13 }
 0x185   : > { %911 = dma.done.wait (!%p718_p3), %s560_s26, 256  }
 0x186   : > { %913 = vsyncadd (!%p718_p3), %s560_s26, 4294967040  ;;  %p18_p7 = scmp.ge.s32.totalorder %s1020_s27, 10   ;;  %s1189_s15 = smov %s920_s16 }
 0x187   : > { %s1190_s16 = smov %s924_s17  ;;  %s1191_s17 = smov %s1046_s24 }
 0x188   : > { %s1192_s18 = smov %s1020_s27  ;;  %20 = sbr.rel (!%p18_p7) target bundleno = 6 (0x6), region = 85 }
 0x18f   :  { %565 = vsyncpa [#allocation4], 1 }
 0x190   :  { %567 = vsyncpa [#allocation4 + $0x1], 1 }
 0x191   :  { %568 = vsyncpa [#allocation7], 1 }
 0x192   :  { %569 = vsyncpa [#allocation5], 1 }
 0x193   :  { %571 = vsyncpa [#allocation5 + $0x1], 1 }

</bundles_post_ra>
